<compile_context>
chip_gen: v7x
topology: tpu7x:2x2x1
jax: 0.10.0
libtpu: 0.0.40
codegen_flags: <defaults>
</compile_context>

<pallas_src>
import functools

import jax
import jax.numpy as jnp
from jax import lax
from jax.experimental import pallas as pl
from jax.experimental.pallas import tpu as pltpu


_OUT_LANES = 128  # one lane-dense 128-wide slab of the output row per grid step


def _hinge_partial_kernel(x_ref, y_ref, b_ref, p_ref, w_ref, bias_ref, out_ref,
                          *, n_total):
    """One N-tile: partial sum of clamp_min(1 - Y*(X@w + b + (B/p)*||w||2), 0)."""
    n_blk = x_ref.shape[0]

    # In-kernel upcast: operands arrive in their native dtype (no-op for f32).
    x = x_ref[...].astype(jnp.float32)          # (n_blk, D), D lane-dense
    y = y_ref[...].astype(jnp.float32)          # (n_blk, 1)
    bvec = b_ref[...].astype(jnp.float32)       # (n_blk, 1)
    phat = p_ref[...].astype(jnp.float32)       # (n_blk, 1)
    w = w_ref[...].astype(jnp.float32)          # (1, D), resident
    bias = bias_ref[0, 0]                       # SMEM scalar read

    # product(X) = X @ w + b as a VPU multiply + cross-lane (XLU) reduce:
    # a (*, 1)-wide MXU matmul would leave the systolic array idle.
    prod = jnp.sum(x * w, axis=1, keepdims=True) + bias          # (n_blk, 1)

    # w_norm() = ||w||_2, kept (1, 1) so it broadcasts down the column.
    w_norm = jnp.sqrt(jnp.sum(w * w, axis=1, keepdims=True))     # (1, 1)

    # Exact division (parity with torch.div; approx reciprocal dropped).
    hinge = 1.0 - y * (prod + (bvec / phat) * w_norm)            # (n_blk, 1)
    clamped = jnp.maximum(hinge, 0.0)

    # Mask padded rows of a ragged final tile (static trace-time decision).
    if n_total % n_blk != 0:
        rows = pl.program_id(0) * n_blk + lax.broadcasted_iota(
            jnp.int32, (n_blk, 1), 0)
        clamped = jnp.where(rows < n_total, clamped, 0.0)

    partial = jnp.sum(clamped, axis=0, keepdims=True)            # (1, 1)

    # Lane-dense (1, 128) store: partial sum in lane 0, zeros elsewhere.
    lane = lax.broadcasted_iota(jnp.int32, (1, _OUT_LANES), 1)
    out_ref[...] = jnp.where(lane == 0, partial, 0.0)


def _choose_block_rows(n, d, itemsize, budget_bytes=12 << 20):
    """Largest N-tile (<= 1024 rows) whose double-buffered X tile fits budget.

    12 MiB * 2 buffers keeps the pipeline under v5e's 16 MiB scoped default and
    comfortably inside v7x's 64 MiB physical VMEM; cap at 1024 rows (>= ~512
    lanes of work per step, amortizing the ~0.35 us/step overhead on v6e/v7x).
    """
    max_rows = max(8, budget_bytes // (2 * d * itemsize))
    n_blk = int(min(1024, max_rows, n))
    if n_blk < n:
        n_blk = max(8, (n_blk // 8) * 8)   # sublane-aligned unless it spans all of N
    return n_blk


def strategic_hinge_loss(X, w, b, B, Y, p_hat, *, block_rows=None):
    """X:(N,D), w:(D,1), b:(1,1)/scalar, B/Y/p_hat:(N,1) -> scalar f32 loss."""
    N, D = X.shape

    # Only tiny (D- or 1-element) layout plumbing in the wrapper; X untouched.
    w_row = jnp.reshape(w, (1, D))
    b_s = jnp.reshape(b, (1, 1)).astype(jnp.float32)
    Y = jnp.reshape(Y, (N, 1))
    B = jnp.reshape(B, (N, 1))
    p_hat = jnp.reshape(p_hat, (N, 1))

    n_blk = block_rows if block_rows is not None else _choose_block_rows(
        N, D, jnp.dtype(X.dtype).itemsize)
    grid = (pl.cdiv(N, n_blk),)
    g = grid[0]

    col_spec = pl.BlockSpec((n_blk, 1), lambda i: (i, 0))
    partials = pl.pallas_call(
        functools.partial(_hinge_partial_kernel, n_total=N),
        out_shape=jax.ShapeDtypeStruct((1, g * _OUT_LANES), jnp.float32),
        grid=grid,
        in_specs=[
            pl.BlockSpec((n_blk, D), lambda i: (i, 0)),          # X, native layout
            col_spec,                                            # Y
            col_spec,                                            # B
            col_spec,                                            # p_hat
            pl.BlockSpec((1, D), lambda i: (0, 0)),              # w (resident)
            pl.BlockSpec(memory_space=pltpu.MemorySpace.SMEM),   # bias scalar
        ],
        out_specs=pl.BlockSpec((1, _OUT_LANES), lambda i: (0, i)),
        compiler_params=pltpu.CompilerParams(
            dimension_semantics=("parallel",),     # partial sums -> both v7x TCs usable
            vmem_limit_bytes=32 * 1024 * 1024,
        ),
    )(X, Y, B, p_hat, w_row, b_s)

    # Finish the tiny mean outside the kernel (partial lives in lane 0 of each slab).
    return jnp.sum(partials) / N


def _ref_loss(X, w, b, B, Y, p_hat):
    prod = X @ jnp.reshape(w, (-1, 1)) + jnp.reshape(b, ())
    w_norm = jnp.sqrt(jnp.sum(jnp.square(w)))
    hinge = 1.0 - Y * (prod + (B / p_hat) * w_norm)
    return jnp.mean(jnp.maximum(hinge, 0.0))


if __name__ == "__main__":
    key = jax.random.PRNGKey(0)
    kx, kw, kb, kB, ky = jax.random.split(key, 5)

    # Small shapes consistent with a linear-regression forward.
    N, D = 16, 32
    X = jax.random.normal(kx, (N, D), dtype=jnp.float32)
    w = jax.random.normal(kw, (D, 1), dtype=jnp.float32) * 0.1
    b = jax.random.normal(kb, (1, 1), dtype=jnp.float32) * 0.1
    B = jax.random.normal(kB, (N, 1), dtype=jnp.float32)
    Y = jnp.where(jax.random.bernoulli(ky, 0.5, (N, 1)), 1.0, -1.0).astype(jnp.float32)
    p_hat = jnp.full((N, 1), 0.5, dtype=jnp.float32)

    loss = strategic_hinge_loss(X, w, b, B, Y, p_hat)
    jax.block_until_ready(loss)
    loss_ref = _ref_loss(X, w, b, B, Y, p_hat)
    assert jnp.allclose(loss, loss_ref, rtol=1e-5, atol=1e-5), (loss, loss_ref)

    # Exercise the multi-tile grid + ragged-tail masking path at small scale.
    N2 = 20
    k2x, k2B, k2y, k2p = jax.random.split(jax.random.PRNGKey(1), 4)
    X2 = jax.random.normal(k2x, (N2, D), dtype=jnp.float32)
    B2 = jax.random.normal(k2B, (N2, 1), dtype=jnp.float32)
    Y2 = jnp.where(jax.random.bernoulli(k2y, 0.5, (N2, 1)), 1.0, -1.0).astype(jnp.float32)
    p2 = 0.25 + 0.5 * jax.random.uniform(k2p, (N2, 1), dtype=jnp.float32)

    loss2 = strategic_hinge_loss(X2, w, b, B2, Y2, p2, block_rows=8)  # grid=(3,), ragged tail
    jax.block_until_ready(loss2)
    loss2_ref = _ref_loss(X2, w, b, B2, Y2, p2)
    assert jnp.allclose(loss2, loss2_ref, rtol=1e-5, atol=1e-5), (loss2, loss2_ref)

    print("KERNEL_OK")
</pallas_src>

<mosaic_0001>
module attributes {stable_mosaic.version = 11 : i64} {
  func.func @_hinge_partial_kernel(%arg0: i32, %arg1: memref<16x32xf32, #tpu.memory_space<vmem>>, %arg2: memref<16x1xf32, #tpu.memory_space<vmem>>, %arg3: memref<16x1xf32, #tpu.memory_space<vmem>>, %arg4: memref<16x1xf32, #tpu.memory_space<vmem>>, %arg5: memref<1x32xf32, #tpu.memory_space<vmem>>, %arg6: memref<1x1xf32, #tpu.memory_space<smem>>, %arg7: memref<1x128xf32, #tpu.memory_space<vmem>>) attributes {dimension_semantics = [#tpu.dimension_semantics<parallel>], iteration_bounds = array<i64: 1>, scalar_prefetch = 0 : i64, scratch_operands = 0 : i64, tpu.core_type = #tpu.core_type<tc>, window_params = [{transform_indices = @transform_0, window_bounds = array<i64: 16, 32>}, {transform_indices = @transform_1, window_bounds = array<i64: 16, 1>}, {transform_indices = @transform_2, window_bounds = array<i64: 16, 1>}, {transform_indices = @transform_3, window_bounds = array<i64: 16, 1>}, {pipeline_mode = #tpu.pipeline_mode<synchronous>, transform_indices = @transform_4, window_bounds = array<i64: 1, 32>}, {transform_indices = @transform_5, window_bounds = array<i64: 1, 1>}, {transform_indices = @transform_6, window_bounds = array<i64: 1, 128>}]} {
    %c0 = arith.constant 0 : index
    %c0_0 = arith.constant 0 : index
    %0 = vector.load %arg1[%c0, %c0_0] : memref<16x32xf32, #tpu.memory_space<vmem>>, vector<16x32xf32>
    %c0_1 = arith.constant 0 : index
    %c0_2 = arith.constant 0 : index
    %1 = vector.load %arg2[%c0_1, %c0_2] : memref<16x1xf32, #tpu.memory_space<vmem>>, vector<16x1xf32>
    %c0_3 = arith.constant 0 : index
    %c0_4 = arith.constant 0 : index
    %2 = vector.load %arg3[%c0_3, %c0_4] : memref<16x1xf32, #tpu.memory_space<vmem>>, vector<16x1xf32>
    %c0_5 = arith.constant 0 : index
    %c0_6 = arith.constant 0 : index
    %3 = vector.load %arg4[%c0_5, %c0_6] : memref<16x1xf32, #tpu.memory_space<vmem>>, vector<16x1xf32>
    %c0_7 = arith.constant 0 : index
    %c0_8 = arith.constant 0 : index
    %4 = vector.load %arg5[%c0_7, %c0_8] : memref<1x32xf32, #tpu.memory_space<vmem>>, vector<1x32xf32>
    %c0_9 = arith.constant 0 : index
    %c0_10 = arith.constant 0 : index
    %5 = memref.load %arg6[%c0_9, %c0_10] : memref<1x1xf32, #tpu.memory_space<smem>>
    %6 = vector.broadcast %4 : vector<1x32xf32> to vector<16x32xf32>
    %7 = arith.mulf %0, %6 : vector<16x32xf32>
    %cst = arith.constant dense<0.000000e+00> : vector<16xf32>
    %8 = vector.multi_reduction <add>, %7, %cst [1] : vector<16x32xf32> to vector<16xf32>
    %9 = vector.shape_cast %8 : vector<16xf32> to vector<16x1xf32>
    %10 = vector.broadcast %5 : f32 to vector<16x1xf32>
    %11 = arith.addf %9, %10 : vector<16x1xf32>
    %12 = arith.mulf %4, %4 : vector<1x32xf32>
    %cst_11 = arith.constant dense<0.000000e+00> : vector<1xf32>
    %13 = vector.multi_reduction <add>, %12, %cst_11 [1] : vector<1x32xf32> to vector<1xf32>
    %14 = vector.shape_cast %13 : vector<1xf32> to vector<1x1xf32>
    %15 = math.sqrt %14 : vector<1x1xf32>
    %16 = arith.divf %2, %3 : vector<16x1xf32>
    %17 = vector.broadcast %15 : vector<1x1xf32> to vector<16x1xf32>
    %18 = arith.mulf %16, %17 : vector<16x1xf32>
    %19 = arith.addf %11, %18 : vector<16x1xf32>
    %20 = arith.mulf %1, %19 : vector<16x1xf32>
    %cst_12 = arith.constant 1.000000e+00 : f32
    %21 = vector.broadcast %cst_12 : f32 to vector<16x1xf32>
    %22 = arith.subf %21, %20 : vector<16x1xf32>
    %cst_13 = arith.constant 0.000000e+00 : f32
    %23 = vector.broadcast %cst_13 : f32 to vector<16x1xf32>
    %24 = arith.maximumf %22, %23 : vector<16x1xf32>
    %cst_14 = arith.constant dense<0.000000e+00> : vector<1xf32>
    %25 = vector.multi_reduction <add>, %24, %cst_14 [0] : vector<16x1xf32> to vector<1xf32>
    %26 = vector.shape_cast %25 : vector<1xf32> to vector<1x1xf32>
    %27 = tpu.iota {dimensions = array<i32: 1>} : vector<1x128xi32>
    %c0_i32 = arith.constant 0 : i32
    %28 = vector.broadcast %c0_i32 : i32 to vector<1x128xi32>
    %29 = arith.cmpi eq, %27, %28 : vector<1x128xi32>
    %cst_15 = arith.constant 0.000000e+00 : f32
    %30 = vector.shape_cast %26 : vector<1x1xf32> to vector<1x1xf32>
    %31 = vector.broadcast %30 : vector<1x1xf32> to vector<1x128xf32>
    %32 = vector.broadcast %cst_15 : f32 to vector<1x128xf32>
    %33 = arith.select %29, %31, %32 : vector<1x128xi1>, vector<1x128xf32>
    %c0_16 = arith.constant 0 : index
    %c0_17 = arith.constant 0 : index
    %34 = vector.load %arg7[%c0_16, %c0_17] : memref<1x128xf32, #tpu.memory_space<vmem>>, vector<1x128xf32>
    tpu.vector_store %arg7[%c0_16, %c0_17], %33 {strides = array<i32>} : memref<1x128xf32, #tpu.memory_space<vmem>>, vector<1x128xf32>,
    return
  }
  func.func @transform_0(%arg0: i32) -> (i32, i32) {
    %c0_i32 = arith.constant 0 : i32
    %c0_i32_0 = arith.constant 0 : i32
    return %arg0, %c0_i32 : i32, i32
  }
  func.func @transform_1(%arg0: i32) -> (i32, i32) {
    %c0_i32 = arith.constant 0 : i32
    %c0_i32_0 = arith.constant 0 : i32
    return %arg0, %c0_i32 : i32, i32
  }
  func.func @transform_2(%arg0: i32) -> (i32, i32) {
    %c0_i32 = arith.constant 0 : i32
    %c0_i32_0 = arith.constant 0 : i32
    return %arg0, %c0_i32 : i32, i32
  }
  func.func @transform_3(%arg0: i32) -> (i32, i32) {
    %c0_i32 = arith.constant 0 : i32
    %c0_i32_0 = arith.constant 0 : i32
    return %arg0, %c0_i32 : i32, i32
  }
  func.func @transform_4(%arg0: i32) -> (i32, i32) {
    %c0_i32 = arith.constant 0 : i32
    %c0_i32_0 = arith.constant 0 : i32
    %c0_i32_1 = arith.constant 0 : i32
    return %c0_i32, %c0_i32_0 : i32, i32
  }
  func.func @transform_5(%arg0: i32) -> (i32, i32) {
    %c0_i32 = arith.constant 0 : i32
    %c0_i32_0 = arith.constant 0 : i32
    %c0_i32_1 = arith.constant 0 : i32
    return %c0_i32, %c0_i32_0 : i32, i32
  }
  func.func @transform_6(%arg0: i32) -> (i32, i32) {
    %c0_i32 = arith.constant 0 : i32
    %c0_i32_0 = arith.constant 0 : i32
    return %c0_i32, %arg0 : i32, i32
  }
}

</mosaic_0001>

<bundles_post_ra>
// kernel: tpu_custom_call.1
= control target key start
LH: loop header
LB: loop body
LE: loop exit
PB: predicated region body
PF: predicated region fallthrough
CT: control target
= control target key end

     0   :  { %vm54_vm0 = vcmask 253952   ;;  %v36_v1 = vlaneseq  ;;  %s232_s0 = inlined_call_operand.vmem [shape: f32[16,32], index: 0, kind: input, shape index: {}]   ;;  %s233_s1 = inlined_call_operand.vmem [shape: f32[16,1], index: 1, kind: input, shape index: {}]   ;;  %s234_s2 = inlined_call_operand.vmem [shape: f32[16,1], index: 2, kind: input, shape index: {}]   ;;  %s235_s3 = inlined_call_operand.vmem [shape: f32[16,1], index: 3, kind: input, shape index: {}]   ;;  %s236_s4 = inlined_call_operand.vmem [shape: f32[1,32], index: 4, kind: input, shape index: {}]   ;;  %s237_s5 = inlined_call_operand.<no memory space> [shape: f32[1,1], index: 5, kind: input, shape index: {}]   ;;  %s238_s6 = inlined_call_operand.hbm [shape: f32[1,128], index: 6, kind: output, shape index: {}]  }
   0x1   :  { %v33_v0 = vld [vmem:[%s236_s4] sm:$0x1] }
   0x2   :  { %v53_v2 = vmul.f32 %v33_v0, %v33_v0 }
   0x3   :  { %12 = vsyncpa [#allocation4], 0  ;;  %v37_v3 = vshrl.u32 %v36_v1, 7  ;;  %v26_v6 = vld [vmem:[%s232_s0 + $0x8] sm:$0xff]  ;;  %v25_v7 = vld [vmem:[%s232_s0] sm:$0xff]  ;;  %vm43_vm1 = vcmask 261120   ;;  %v50_v24 = vstv %s237_s5 }
   0x4   :  { %v55_v4 = vsel %vm54_vm0, %v53_v2, 0.0  ;;  %v151_v13 = vmov 0   ;;  %v32_v14 = vld [vmem:[%s235_s3 + $0x8] sm:$0xff]  ;;  %v31_v15 = vld [vmem:[%s235_s3] sm:$0xff]  ;;  %vm83_vm4 = vcmask 7168   ;;  %v94_v55 = vand.u32 127, %v36_v1 }
   0x5   :  { %56 = vadd.xlane.f32.xlu0 %v55_v4  ;;  %v38_v5 = vsub.s32 0, %v37_v3  ;;  %119 = vset.pattern.permute.xlu1 %v151_v13  ;;  %121 = vrcp.f32 %v32_v14  ;;  %v30_v20 = vld [vmem:[%s234_s2 + $0x8] sm:$0xff]  ;;  %v29_v21 = vld [vmem:[%s234_s2] sm:$0xff] }
   0x6   :  { %120 = vset.pattern.permute.xlu0 %v151_v13  ;;  %123 = vrcp.f32 %v31_v15  ;;  %v28_v36 = vld [vmem:[%s233_s1 + $0x8] sm:$0xff]  ;;  %v27_v37 = vld [vmem:[%s233_s1] sm:$0xff]  ;;  %s152_s1 = smov [#allocation3]   ;;  %vm95_vm5 = vcmp.eq.s32.totalorder %v94_v55, 0 }
   0x7   :  { %v39_v8 = vrot.slane %v33_v0, %v38_v5  ;;  %s109_s5 = sshll.u32 %s152_s1, 4  ;;  %s110_s5 = int_to_ptr.vmem [resolvable:$true] %s109_s5 }
   0x8   :  { %s127_s13 = scalar_lea.vmem %s110_s5, 16  ;;  %s131_s14 = scalar_lea.vmem %s110_s5, 32 }
   0x9   :  { %v42_v9 = vmul.f32 %v39_v8, %v26_v6  ;;  %v41_v10 = vmul.f32 %v39_v8, %v25_v7  ;;  %p128_p0 = scmp.ne.s32.totalorder %s110_s5, %s127_s13  ;;  %p132_p1 = scmp.lt.s32.totalorder %s110_s5, %s110_s5 }
   0xa   :  { %p133_p2 = scmp.lt.s32.totalorder %s131_s14, %s127_s13 }
   0xb   :  { %v47_v11 = vsel %vm43_vm1, %v42_v9, 0.0  ;;  %v44_v12 = vsel %vm43_vm1, %v41_v10, 0.0 }
   0xc   :  { %48 = vadd.xlane.f32.xlu1 %v47_v11  ;;  %45 = vadd.xlane.f32.xlu0 %v44_v12  ;;  %p134_p3 = por %p133_p2, %p132_p1 }
   0xe   :  { %p135_p4 = pnand %p134_p3, %p128_p0 }
   0xf   :  { %v122_v17 = vpop.eup %121 }
  0x10   :  { %v124_v18 = vpop.eup %123  ;;  %v68_v28 = vmul.f32 %v122_v17, %v30_v20 }
  0x11   :  { %v66_v29 = vmul.f32 %v124_v18, %v29_v21 }
  0x92   :  { %v57_v16 = vpop.xlane.xlu0 %56 }
  0x93   :  { %125 = vrsqrt.f32 %v57_v16  ;;  %vm60_vm2 = vcmp.eq.f32.partialorder %v57_v16, inf  ;;  %v63_v23 = vand.u32 2147483648, %v57_v16  ;;  %vm62_vm3 = vcmp.eq.f32.partialorder %v57_v16, 0.0 }
  0x99   :  { %v49_v25 = vpop.xlane.xlu1 %48  ;;  %v46_v26 = vpop.xlane.xlu0 %45 }
  0x9a   :  { %v52_v32 = vadd.f32 %v50_v24, %v49_v25  ;;  %v51_v33 = vadd.f32 %v50_v24, %v46_v26 }
  0x9d   :  { %v126_v19 = vpop.eup %125 }
  0x9e   :  { %v59_v22 = vmul.f32 %v126_v19, %v57_v16 }
  0xa0   :  { %v61_v27 = vsel %vm60_vm2, %v57_v16, %v59_v22 }
  0xa1   :  { %v64_v30 = vsel %vm62_vm3, %v63_v23, %v61_v27 }
  0xa2   :  { %v72_v31 = vrot.slane %v64_v30, %v38_v5 }
  0xa4   :  { %v74_v34 = vmul.f32 %v72_v31, %v68_v28  ;;  %v73_v35 = vmul.f32 %v72_v31, %v66_v29 }
  0xa6   :  { %v76_v38 = vadd.f32 %v74_v34, %v52_v32  ;;  %v75_v39 = vadd.f32 %v73_v35, %v51_v33 }
  0xa8   :  { %v78_v40 = vmul.f32 %v76_v38, %v28_v36  ;;  %v77_v41 = vmul.f32 %v75_v39, %v27_v37 }
  0xaa   :  { %v80_v42 = vsub.f32 1.0, %v78_v40  ;;  %v79_v43 = vsub.f32 1.0, %v77_v41 }
  0xac   :  { %v82_v44 = vmax.f32 %v80_v42, 0.0  ;;  %v81_v45 = vmax.f32 %v79_v43, 0.0 }
  0xae   :  { %v85_v46 = vsel %vm83_vm4, %v82_v44, 0.0  ;;  %v84_v47 = vsel %vm83_vm4, %v81_v45, 0.0 }
  0xaf   :  { %v86_v48 = vadd.f32 %v85_v46, %v84_v47 }
  0xb1   :  { %v87_v49 = vrot.slane %v86_v48, 4 }
  0xb3   :  { %v88_v50 = vadd.f32 %v87_v49, %v86_v48 }
  0xb5   :  { %v89_v51 = vrot.slane %v88_v50, 2 }
  0xb7   :  { %v90_v52 = vadd.f32 %v89_v51, %v88_v50 }
  0xb9   :  { %v91_v53 = vrot.slane %v90_v52, 1 }
  0xbb   :  { %v92_v54 = vadd.f32 %v91_v53, %v90_v52 }
  0xbd   :  { %98 = vperm.xlu1 %119, %v92_v54  }
 0x13c   :  { %v99_v56 = vpop.permute.xlu1 %98 }
 0x13d   :  { %v101_v57 = vsel %vm95_vm5, %v99_v56, 0.0 }
 0x13e   :  { %102 = vst [vmem:[#allocation3] sm:$0x1] %v101_v57 }
 0x13f   :  { %138 = shalt.err (!%p135_p4)
}
 0x140   :  { %s139_s17 = scalar_lea.hbm %s238_s6, 16 }
 0x141   :  { %p140_p5 = scmp.ne.s32.totalorder %s238_s6, %s139_s17  ;;  %p143_p6 = scmp.lt.u32.totalorder %s139_s17, %s238_s6 }
 0x143   :  { %p145_p7 = pnand %p143_p6, %p140_p5 }
 0x145   :  { %148 = shalt.err (!%p145_p7)
}
 0x146   :  { %112 = dma.vmem_to_hbm [thread:$0]  %s110_s5, 16, %s238_s6, [#allocation4]  }
 0x147   :  { %149 = dma.done.wait [#allocation4], 16  }
 0x148   :  { %150 = vsyncadd [#allocation4], 4294967280 }
 0x149   :  { %116 = vsyncpa [#allocation4], 1 }

</bundles_post_ra>
